<compile_context>
chip_gen: v6e
topology: v6e:2x2x1
jax: 0.10.0
libtpu: 0.0.40
codegen_flags: <defaults>
</compile_context>

<pallas_src>
import jax
import jax.numpy as jnp
from jax.experimental import pallas as pl
from jax.experimental.pallas import tpu as pltpu

HIDDEN_DIM = 32        # the module references a global HIDDEN_DIM
LEAKY_SLOPE = 0.01     # nn.LeakyReLU() default
LN_EPS = 1e-5          # nn.LayerNorm default


def _leaky_relu(x):
    # Valid because 0 < slope < 1: max(x, s*x) == leaky_relu(x). Single VPU op.
    return jnp.maximum(x, LEAKY_SLOPE * x)


def _layer_norm(x, gamma, beta):
    # Two independent cross-lane reductions (sum x, sum x*x) so they can
    # pipeline back-to-back through the XLU.
    mu = jnp.mean(x, axis=-1, keepdims=True)
    msq = jnp.mean(x * x, axis=-1, keepdims=True)
    var = jnp.maximum(msq - mu * mu, 0.0)
    return (x - mu) * jax.lax.rsqrt(var + LN_EPS) * gamma + beta


def critic_kernel(x_ref,
                  w1_ref, b1_ref, g1_ref, be1_ref,
                  w2_ref, b2_ref, g2_ref, be2_ref,
                  wq_ref, bq_ref,
                  q_ref):
    x = x_ref[...].astype(jnp.float32)

    # linear1 -> LeakyReLU -> LayerNorm1
    h = jnp.dot(x, w1_ref[...], preferred_element_type=jnp.float32) + b1_ref[...]
    h = _leaky_relu(h)
    h = _layer_norm(h, g1_ref[...], be1_ref[...])

    # linear2 -> LeakyReLU -> LayerNorm2
    h = jnp.dot(h, w2_ref[...], preferred_element_type=jnp.float32) + b2_ref[...]
    h = _leaky_relu(h)
    h = _layer_norm(h, g2_ref[...], be2_ref[...])

    # q head
    q = jnp.dot(h, wq_ref[...], preferred_element_type=jnp.float32) + bq_ref[...]
    q_ref[...] = q.astype(q_ref.dtype)


def _round_up(n, m):
    return ((n + m - 1) // m) * m


def critic_forward(x, params, *, batch_tile=4096):
    """x: [B, ip_dim] float32; params: dict of weights (see init_params).

    batch_tile: rows of x processed per grid step. Big enough to amortize the
    ~0.35 us per-grid-step overhead, small enough that the lane-padded VMEM
    footprint (~3.5 KB/row, see header comment) stays well inside the scoped
    VMEM limit on v5e / v6e / v7x.
    """
    B, ip_dim = x.shape
    hid = params["w1"].shape[1]
    op_dim = params["wq"].shape[1]

    # Tile must be a multiple of 8 (sublane); cap at the (padded) batch.
    tb = min(_round_up(batch_tile, 8), _round_up(B, 8))
    Bp = _round_up(B, tb)
    if Bp != B:
        x = jnp.pad(x, ((0, Bp - B), (0, 0)))
    num_tiles = Bp // tb

    param_args = (
        params["w1"], params["b1"], params["g1"], params["be1"],
        params["w2"], params["b2"], params["g2"], params["be2"],
        params["wq"], params["bq"],
    )

    # x streams over the batch; params are resident (constant block index).
    x_spec = pl.BlockSpec((tb, ip_dim), lambda i: (i, 0))

    def _resident_spec(shape):
        return pl.BlockSpec(shape, lambda i: (0, 0))

    in_specs = [x_spec] + [_resident_spec(p.shape) for p in param_args]
    out_spec = pl.BlockSpec((tb, op_dim), lambda i: (i, 0))

    flops = 2 * Bp * (ip_dim * hid + hid * hid + hid * op_dim)
    param_bytes = sum(int(p.size) * p.dtype.itemsize for p in param_args)
    bytes_accessed = Bp * (ip_dim + op_dim) * 4 + param_bytes

    out = pl.pallas_call(
        critic_kernel,
        out_shape=jax.ShapeDtypeStruct((Bp, op_dim), jnp.float32),
        grid=(num_tiles,),
        in_specs=in_specs,
        out_specs=out_spec,
        compiler_params=pltpu.CompilerParams(
            dimension_semantics=("parallel",),
            vmem_limit_bytes=32 << 20),      # headroom; safe on v5e/v6e/v7x
        cost_estimate=pl.CostEstimate(
            flops=flops,
            transcendentals=2 * Bp,          # two rsqrt per row
            bytes_accessed=bytes_accessed),
    )(x, *param_args)

    return out[:B]


def init_params(key, ip_dim, hidden_dim, op_dim):
    """Deterministic init mimicking PyTorch Linear defaults (uniform ±1/sqrt(fan_in)).
    Weights are stored as [in, out] (transposed vs. torch's [out, in])."""
    ks = jax.random.split(key, 6)

    def lin(kw, kb, fan_in, fan_out):
        bound = 1.0 / jnp.sqrt(jnp.float32(fan_in))
        w = jax.random.uniform(kw, (fan_in, fan_out), jnp.float32, -bound, bound)
        b = jax.random.uniform(kb, (1, fan_out), jnp.float32, -bound, bound)
        return w, b

    w1, b1 = lin(ks[0], ks[1], ip_dim, hidden_dim)
    w2, b2 = lin(ks[2], ks[3], hidden_dim, hidden_dim)
    wq, bq = lin(ks[4], ks[5], hidden_dim, op_dim)

    return {
        "w1": w1, "b1": b1,
        "g1": jnp.ones((1, hidden_dim), jnp.float32),
        "be1": jnp.zeros((1, hidden_dim), jnp.float32),
        "w2": w2, "b2": b2,
        "g2": jnp.ones((1, hidden_dim), jnp.float32),
        "be2": jnp.zeros((1, hidden_dim), jnp.float32),
        "wq": wq, "bq": bq,
    }


def _reference_forward(x, p):
    def ln(h, g, b):
        mu = h.mean(-1, keepdims=True)
        var = ((h - mu) ** 2).mean(-1, keepdims=True)
        return (h - mu) / jnp.sqrt(var + LN_EPS) * g + b

    h = x @ p["w1"] + p["b1"]
    h = jnp.where(h > 0, h, LEAKY_SLOPE * h)
    h = ln(h, p["g1"], p["be1"])
    h = h @ p["w2"] + p["b2"]
    h = jnp.where(h > 0, h, LEAKY_SLOPE * h)
    h = ln(h, p["g2"], p["be2"])
    return h @ p["wq"] + p["bq"]


if __name__ == "__main__":
    key = jax.random.PRNGKey(0)
    k_x, k_p = jax.random.split(key)

    batch = 8
    ip_dim = 16
    op_dim = 1  # critic outputs a single Q value per sample

    x = jax.random.normal(k_x, (batch, ip_dim), jnp.float32)
    params = init_params(k_p, ip_dim, HIDDEN_DIM, op_dim)

    q = critic_forward(x, params)
    q = jax.block_until_ready(q)

    q_ref = _reference_forward(x, params)
    assert q.shape == (batch, op_dim)
    assert jnp.allclose(q, q_ref, atol=1e-4, rtol=1e-4), "mismatch vs reference"

    print("KERNEL_OK")
</pallas_src>

<mosaic_0001>
module attributes {stable_mosaic.version = 11 : i64} {
  func.func @critic_kernel(%arg0: i32, %arg1: memref<8x16xf32, #tpu.memory_space<vmem>>, %arg2: memref<16x32xf32, #tpu.memory_space<vmem>>, %arg3: memref<1x32xf32, #tpu.memory_space<vmem>>, %arg4: memref<1x32xf32, #tpu.memory_space<vmem>>, %arg5: memref<1x32xf32, #tpu.memory_space<vmem>>, %arg6: memref<32x32xf32, #tpu.memory_space<vmem>>, %arg7: memref<1x32xf32, #tpu.memory_space<vmem>>, %arg8: memref<1x32xf32, #tpu.memory_space<vmem>>, %arg9: memref<1x32xf32, #tpu.memory_space<vmem>>, %arg10: memref<32x1xf32, #tpu.memory_space<vmem>>, %arg11: memref<1x1xf32, #tpu.memory_space<vmem>>, %arg12: memref<8x1xf32, #tpu.memory_space<vmem>>) attributes {dimension_semantics = [#tpu.dimension_semantics<parallel>], iteration_bounds = array<i64: 1>, scalar_prefetch = 0 : i64, scratch_operands = 0 : i64, tpu.core_type = #tpu.core_type<tc>, window_params = [{transform_indices = @transform_0, window_bounds = array<i64: 8, 16>}, {pipeline_mode = #tpu.pipeline_mode<synchronous>, transform_indices = @transform_1, window_bounds = array<i64: 16, 32>}, {pipeline_mode = #tpu.pipeline_mode<synchronous>, transform_indices = @transform_2, window_bounds = array<i64: 1, 32>}, {pipeline_mode = #tpu.pipeline_mode<synchronous>, transform_indices = @transform_3, window_bounds = array<i64: 1, 32>}, {pipeline_mode = #tpu.pipeline_mode<synchronous>, transform_indices = @transform_4, window_bounds = array<i64: 1, 32>}, {pipeline_mode = #tpu.pipeline_mode<synchronous>, transform_indices = @transform_5, window_bounds = array<i64: 32, 32>}, {pipeline_mode = #tpu.pipeline_mode<synchronous>, transform_indices = @transform_6, window_bounds = array<i64: 1, 32>}, {pipeline_mode = #tpu.pipeline_mode<synchronous>, transform_indices = @transform_7, window_bounds = array<i64: 1, 32>}, {pipeline_mode = #tpu.pipeline_mode<synchronous>, transform_indices = @transform_8, window_bounds = array<i64: 1, 32>}, {pipeline_mode = #tpu.pipeline_mode<synchronous>, transform_indices = @transform_9, window_bounds = array<i64: 32, 1>}, {pipeline_mode = #tpu.pipeline_mode<synchronous>, transform_indices = @transform_10, window_bounds = array<i64: 1, 1>}, {transform_indices = @transform_11, window_bounds = array<i64: 8, 1>}]} {
    %c0 = arith.constant 0 : index
    %c0_0 = arith.constant 0 : index
    %0 = vector.load %arg1[%c0, %c0_0] : memref<8x16xf32, #tpu.memory_space<vmem>>, vector<8x16xf32>
    %c0_1 = arith.constant 0 : index
    %c0_2 = arith.constant 0 : index
    %1 = vector.load %arg2[%c0_1, %c0_2] : memref<16x32xf32, #tpu.memory_space<vmem>>, vector<16x32xf32>
    %cst = arith.constant dense<0.000000e+00> : vector<8x32xf32>
    %2 = tpu.matmul %0, %1, %cst {dimension_numbers = #tpu.dot_dimension_numbers<[1], [0], [0], [1], [0, 0, 1, 1], [], []>} : vector<8x16xf32>, vector<16x32xf32>, vector<8x32xf32> -> vector<8x32xf32>
    %c0_3 = arith.constant 0 : index
    %c0_4 = arith.constant 0 : index
    %3 = vector.load %arg3[%c0_3, %c0_4] : memref<1x32xf32, #tpu.memory_space<vmem>>, vector<1x32xf32>
    %4 = vector.broadcast %3 : vector<1x32xf32> to vector<8x32xf32>
    %5 = arith.addf %2, %4 : vector<8x32xf32>
    %cst_5 = arith.constant 0.00999999977 : f32
    %6 = vector.broadcast %cst_5 : f32 to vector<8x32xf32>
    %7 = arith.mulf %6, %5 : vector<8x32xf32>
    %8 = arith.maximumf %5, %7 : vector<8x32xf32>
    %c0_6 = arith.constant 0 : index
    %c0_7 = arith.constant 0 : index
    %9 = vector.load %arg4[%c0_6, %c0_7] : memref<1x32xf32, #tpu.memory_space<vmem>>, vector<1x32xf32>
    %c0_8 = arith.constant 0 : index
    %c0_9 = arith.constant 0 : index
    %10 = vector.load %arg5[%c0_8, %c0_9] : memref<1x32xf32, #tpu.memory_space<vmem>>, vector<1x32xf32>
    %cst_10 = arith.constant dense<0.000000e+00> : vector<8xf32>
    %11 = vector.multi_reduction <add>, %8, %cst_10 [1] : vector<8x32xf32> to vector<8xf32>
    %12 = vector.shape_cast %11 : vector<8xf32> to vector<8x1xf32>
    %cst_11 = arith.constant 3.200000e+01 : f32
    %13 = vector.broadcast %cst_11 : f32 to vector<8x1xf32>
    %14 = arith.divf %12, %13 : vector<8x1xf32>
    %15 = arith.mulf %8, %8 : vector<8x32xf32>
    %cst_12 = arith.constant dense<0.000000e+00> : vector<8xf32>
    %16 = vector.multi_reduction <add>, %15, %cst_12 [1] : vector<8x32xf32> to vector<8xf32>
    %17 = vector.shape_cast %16 : vector<8xf32> to vector<8x1xf32>
    %cst_13 = arith.constant 3.200000e+01 : f32
    %18 = vector.broadcast %cst_13 : f32 to vector<8x1xf32>
    %19 = arith.divf %17, %18 : vector<8x1xf32>
    %20 = arith.mulf %14, %14 : vector<8x1xf32>
    %21 = arith.subf %19, %20 : vector<8x1xf32>
    %cst_14 = arith.constant 0.000000e+00 : f32
    %22 = vector.broadcast %cst_14 : f32 to vector<8x1xf32>
    %23 = arith.maximumf %21, %22 : vector<8x1xf32>
    %24 = vector.broadcast %14 : vector<8x1xf32> to vector<8x32xf32>
    %25 = arith.subf %8, %24 : vector<8x32xf32>
    %cst_15 = arith.constant 9.99999974E-6 : f32
    %26 = vector.broadcast %cst_15 : f32 to vector<8x1xf32>
    %27 = arith.addf %23, %26 : vector<8x1xf32>
    %28 = math.rsqrt %27 : vector<8x1xf32>
    %29 = vector.broadcast %28 : vector<8x1xf32> to vector<8x32xf32>
    %30 = arith.mulf %25, %29 : vector<8x32xf32>
    %31 = vector.broadcast %9 : vector<1x32xf32> to vector<8x32xf32>
    %32 = arith.mulf %30, %31 : vector<8x32xf32>
    %33 = vector.broadcast %10 : vector<1x32xf32> to vector<8x32xf32>
    %34 = arith.addf %32, %33 : vector<8x32xf32>
    %c0_16 = arith.constant 0 : index
    %c0_17 = arith.constant 0 : index
    %35 = vector.load %arg6[%c0_16, %c0_17] : memref<32x32xf32, #tpu.memory_space<vmem>>, vector<32x32xf32>
    %cst_18 = arith.constant dense<0.000000e+00> : vector<8x32xf32>
    %36 = tpu.matmul %34, %35, %cst_18 {dimension_numbers = #tpu.dot_dimension_numbers<[1], [0], [0], [1], [0, 0, 1, 1], [], []>} : vector<8x32xf32>, vector<32x32xf32>, vector<8x32xf32> -> vector<8x32xf32>
    %c0_19 = arith.constant 0 : index
    %c0_20 = arith.constant 0 : index
    %37 = vector.load %arg7[%c0_19, %c0_20] : memref<1x32xf32, #tpu.memory_space<vmem>>, vector<1x32xf32>
    %38 = vector.broadcast %37 : vector<1x32xf32> to vector<8x32xf32>
    %39 = arith.addf %36, %38 : vector<8x32xf32>
    %cst_21 = arith.constant 0.00999999977 : f32
    %40 = vector.broadcast %cst_21 : f32 to vector<8x32xf32>
    %41 = arith.mulf %40, %39 : vector<8x32xf32>
    %42 = arith.maximumf %39, %41 : vector<8x32xf32>
    %c0_22 = arith.constant 0 : index
    %c0_23 = arith.constant 0 : index
    %43 = vector.load %arg8[%c0_22, %c0_23] : memref<1x32xf32, #tpu.memory_space<vmem>>, vector<1x32xf32>
    %c0_24 = arith.constant 0 : index
    %c0_25 = arith.constant 0 : index
    %44 = vector.load %arg9[%c0_24, %c0_25] : memref<1x32xf32, #tpu.memory_space<vmem>>, vector<1x32xf32>
    %cst_26 = arith.constant dense<0.000000e+00> : vector<8xf32>
    %45 = vector.multi_reduction <add>, %42, %cst_26 [1] : vector<8x32xf32> to vector<8xf32>
    %46 = vector.shape_cast %45 : vector<8xf32> to vector<8x1xf32>
    %cst_27 = arith.constant 3.200000e+01 : f32
    %47 = vector.broadcast %cst_27 : f32 to vector<8x1xf32>
    %48 = arith.divf %46, %47 : vector<8x1xf32>
    %49 = arith.mulf %42, %42 : vector<8x32xf32>
    %cst_28 = arith.constant dense<0.000000e+00> : vector<8xf32>
    %50 = vector.multi_reduction <add>, %49, %cst_28 [1] : vector<8x32xf32> to vector<8xf32>
    %51 = vector.shape_cast %50 : vector<8xf32> to vector<8x1xf32>
    %cst_29 = arith.constant 3.200000e+01 : f32
    %52 = vector.broadcast %cst_29 : f32 to vector<8x1xf32>
    %53 = arith.divf %51, %52 : vector<8x1xf32>
    %54 = arith.mulf %48, %48 : vector<8x1xf32>
    %55 = arith.subf %53, %54 : vector<8x1xf32>
    %cst_30 = arith.constant 0.000000e+00 : f32
    %56 = vector.broadcast %cst_30 : f32 to vector<8x1xf32>
    %57 = arith.maximumf %55, %56 : vector<8x1xf32>
    %58 = vector.broadcast %48 : vector<8x1xf32> to vector<8x32xf32>
    %59 = arith.subf %42, %58 : vector<8x32xf32>
    %cst_31 = arith.constant 9.99999974E-6 : f32
    %60 = vector.broadcast %cst_31 : f32 to vector<8x1xf32>
    %61 = arith.addf %57, %60 : vector<8x1xf32>
    %62 = math.rsqrt %61 : vector<8x1xf32>
    %63 = vector.broadcast %62 : vector<8x1xf32> to vector<8x32xf32>
    %64 = arith.mulf %59, %63 : vector<8x32xf32>
    %65 = vector.broadcast %43 : vector<1x32xf32> to vector<8x32xf32>
    %66 = arith.mulf %64, %65 : vector<8x32xf32>
    %67 = vector.broadcast %44 : vector<1x32xf32> to vector<8x32xf32>
    %68 = arith.addf %66, %67 : vector<8x32xf32>
    %c0_32 = arith.constant 0 : index
    %c0_33 = arith.constant 0 : index
    %69 = vector.load %arg10[%c0_32, %c0_33] : memref<32x1xf32, #tpu.memory_space<vmem>>, vector<32x1xf32>
    %cst_34 = arith.constant dense<0.000000e+00> : vector<8x1xf32>
    %70 = tpu.matmul %68, %69, %cst_34 {dimension_numbers = #tpu.dot_dimension_numbers<[1], [0], [0], [1], [0, 0, 1, 1], [], []>} : vector<8x32xf32>, vector<32x1xf32>, vector<8x1xf32> -> vector<8x1xf32>
    %c0_35 = arith.constant 0 : index
    %c0_36 = arith.constant 0 : index
    %71 = vector.load %arg11[%c0_35, %c0_36] : memref<1x1xf32, #tpu.memory_space<vmem>>, vector<1x1xf32>
    %72 = vector.broadcast %71 : vector<1x1xf32> to vector<8x1xf32>
    %73 = arith.addf %70, %72 : vector<8x1xf32>
    %c0_37 = arith.constant 0 : index
    %c0_38 = arith.constant 0 : index
    %74 = vector.load %arg12[%c0_37, %c0_38] : memref<8x1xf32, #tpu.memory_space<vmem>>, vector<8x1xf32>
    tpu.vector_store %arg12[%c0_37, %c0_38], %73 {strides = array<i32>} : memref<8x1xf32, #tpu.memory_space<vmem>>, vector<8x1xf32>,
    return
  }
  func.func @transform_0(%arg0: i32) -> (i32, i32) {
    %c0_i32 = arith.constant 0 : i32
    %c0_i32_0 = arith.constant 0 : i32
    return %arg0, %c0_i32 : i32, i32
  }
  func.func @transform_1(%arg0: i32) -> (i32, i32) {
    %c0_i32 = arith.constant 0 : i32
    %c0_i32_0 = arith.constant 0 : i32
    %c0_i32_1 = arith.constant 0 : i32
    return %c0_i32, %c0_i32_0 : i32, i32
  }
  func.func @transform_2(%arg0: i32) -> (i32, i32) {
    %c0_i32 = arith.constant 0 : i32
    %c0_i32_0 = arith.constant 0 : i32
    %c0_i32_1 = arith.constant 0 : i32
    return %c0_i32, %c0_i32_0 : i32, i32
  }
  func.func @transform_3(%arg0: i32) -> (i32, i32) {
    %c0_i32 = arith.constant 0 : i32
    %c0_i32_0 = arith.constant 0 : i32
    %c0_i32_1 = arith.constant 0 : i32
    return %c0_i32, %c0_i32_0 : i32, i32
  }
  func.func @transform_4(%arg0: i32) -> (i32, i32) {
    %c0_i32 = arith.constant 0 : i32
    %c0_i32_0 = arith.constant 0 : i32
    %c0_i32_1 = arith.constant 0 : i32
    return %c0_i32, %c0_i32_0 : i32, i32
  }
  func.func @transform_5(%arg0: i32) -> (i32, i32) {
    %c0_i32 = arith.constant 0 : i32
    %c0_i32_0 = arith.constant 0 : i32
    %c0_i32_1 = arith.constant 0 : i32
    return %c0_i32, %c0_i32_0 : i32, i32
  }
  func.func @transform_6(%arg0: i32) -> (i32, i32) {
    %c0_i32 = arith.constant 0 : i32
    %c0_i32_0 = arith.constant 0 : i32
    %c0_i32_1 = arith.constant 0 : i32
    return %c0_i32, %c0_i32_0 : i32, i32
  }
  func.func @transform_7(%arg0: i32) -> (i32, i32) {
    %c0_i32 = arith.constant 0 : i32
    %c0_i32_0 = arith.constant 0 : i32
    %c0_i32_1 = arith.constant 0 : i32
    return %c0_i32, %c0_i32_0 : i32, i32
  }
  func.func @transform_8(%arg0: i32) -> (i32, i32) {
    %c0_i32 = arith.constant 0 : i32
    %c0_i32_0 = arith.constant 0 : i32
    %c0_i32_1 = arith.constant 0 : i32
    return %c0_i32, %c0_i32_0 : i32, i32
  }
  func.func @transform_9(%arg0: i32) -> (i32, i32) {
    %c0_i32 = arith.constant 0 : i32
    %c0_i32_0 = arith.constant 0 : i32
    %c0_i32_1 = arith.constant 0 : i32
    return %c0_i32, %c0_i32_0 : i32, i32
  }
  func.func @transform_10(%arg0: i32) -> (i32, i32) {
    %c0_i32 = arith.constant 0 : i32
    %c0_i32_0 = arith.constant 0 : i32
    %c0_i32_1 = arith.constant 0 : i32
    return %c0_i32, %c0_i32_0 : i32, i32
  }
  func.func @transform_11(%arg0: i32) -> (i32, i32) {
    %c0_i32 = arith.constant 0 : i32
    %c0_i32_0 = arith.constant 0 : i32
    return %arg0, %c0_i32 : i32, i32
  }
}

</mosaic_0001>

<bundles_post_ra>
// kernel: tpu_custom_call.1
= control target key start
LH: loop header
LB: loop body
LE: loop exit
PB: predicated region body
PF: predicated region fallthrough
CT: control target
= control target key end

     0   :  { %s604_s0 = inlined_call_operand.vmem [shape: f32[8,16], index: 0, kind: input, shape index: {}]   ;;  %s605_s1 = inlined_call_operand.hbm [shape: f32[16,32], index: 1, kind: input, shape index: {}]   ;;  %s606_s2 = inlined_call_operand.vmem [shape: f32[1,32], index: 2, kind: input, shape index: {}]   ;;  %s607_s3 = inlined_call_operand.vmem [shape: f32[1,32], index: 3, kind: input, shape index: {}]   ;;  %s608_s4 = inlined_call_operand.vmem [shape: f32[1,32], index: 4, kind: input, shape index: {}]   ;;  %s609_s5 = inlined_call_operand.vmem [shape: f32[32,32], index: 5, kind: input, shape index: {}]   ;;  %s610_s6 = inlined_call_operand.vmem [shape: f32[1,32], index: 6, kind: input, shape index: {}]   ;;  %s611_s7 = inlined_call_operand.vmem [shape: f32[1,32], index: 7, kind: input, shape index: {}]   ;;  %s612_s8 = inlined_call_operand.vmem [shape: f32[1,32], index: 8, kind: input, shape index: {}]   ;;  %s613_s9 = inlined_call_operand.vmem [shape: f32[32,1], index: 9, kind: input, shape index: {}]   ;;  %s614_s10 = inlined_call_operand.<no memory space> [shape: f32[1,1], index: 10, kind: input, shape index: {}]   ;;  %s615_s11 = inlined_call_operand.vmem [shape: f32[8,1], index: 11, kind: output, shape index: {}]  }
   0x1   :  { %v16_v0 = vstv %s614_s10 }
   0x2   :  { %17 = vst [vmem:[#allocation2] sm:$0x1] %v16_v0 }
   0x3   :  { %18 = vsyncpa [#allocation4], 0  ;;  %s466_s19 = smov [#allocation3]  }
   0x4   :  { %s26_s20 = sshll.u32 %s466_s19, 4  ;;  %s27_s20 = int_to_ptr.vmem [resolvable:$true] %s26_s20 }
   0x5   :  { %s452_s21 = scalar_lea.vmem %s27_s20, 256  ;;  %p457_p1 = scmp.lt.s32.totalorder %s27_s20, %s27_s20 }
   0x6   :  { %p453_p0 = scmp.ne.s32.totalorder %s27_s20, %s452_s21  ;;  %p458_p2 = scmp.lt.s32.totalorder %s452_s21, %s452_s21 }
   0x8   :  { %p459_p3 = por %p458_p2, %p457_p1 }
   0xa   :  { %p460_p4 = pnand %p459_p3, %p453_p0 }
   0xc   :  { %463 = shalt.err (!%p460_p4)
}
   0xd   :  { %s467_s22 = smov 128   ;;  %s468_s23 = smov 8  }
   0xe   :  { %32 = dma.hbm_to_vmem [thread:$0]  %s605_s1, 256, %s27_s20, [#allocation4], %s467_s22, %s467_s22, %s468_s23  }
   0xf   :  { %464 = dma.done.wait [#allocation4], 256  }
  0x10   :  { %465 = vsyncadd [#allocation4], 4294967040  ;;  %v469_v1 = vmov 0.0   ;;  %vm470_vm0 = vmmov 0   ;;  %v56_v2 = vld [vmem:[#allocation3 + $0x8] sm:$0xff]  ;;  %v55_v3 = vld [vmem:[#allocation3] sm:$0xff] }
  0x11   :  { %406 = vmatprep.subr.mxu0 %v469_v1  ;;  %410 = vmatprep.mubr.msk.f32.mxu0 %vm470_vm0, %v469_v1  ;;  %v54_v4 = vld [vmem:[%s604_s0] sm:$0xff]  ;;  %vm64_vm1 = vcmask 130048   ;;  %vm142_vm2 = vcmask 261120   ;;  %v177_v14 = vld [vmem:[%s609_s5 + $0x18] sm:$0xff]  ;;  %v176_v15 = vld [vmem:[%s609_s5 + $0x10] sm:$0xff]  ;;  %vm376_vm3 = vcmask 7168  }
  0x12   :  { %413 = vmatprep.subr.mxu1 %v469_v1  ;;  %421 = vmatprep.mubr.msk.f32.mxu1 %vm470_vm0, %v469_v1  ;;  %v383_v5 = vld [vmem:[%s606_s2] ss:$0 sm:$0xff]  ;;  %v175_v16 = vld [vmem:[%s609_s5 + $0x8] sm:$0xff]  ;;  %v295_v42 = vld [vmem:[%s613_s9 + $0x18] sm:$0xff] }
  0x13   :  { %407 = vmatpush3.msra.mxu0 %v56_v2  ;;  %414 = vmatpush3.msra.mxu1 %v177_v14  ;;  %v174_v17 = vld [vmem:[%s609_s5] sm:$0xff]  ;;  %v294_v43 = vld [vmem:[%s613_s9 + $0x10] sm:$0xff]  ;;  %v293_v44 = vld [vmem:[%s613_s9 + $0x8] sm:$0xff] }
  0x14   :  { %408 = vmatprep.subr.mxu0 %v469_v1  ;;  %415 = vmatprep.subr.mxu1 %v469_v1  ;;  %v385_v28 = vld [vmem:[%s607_s3] ss:$0 sm:$0xff] }
  0x15   :  { %409 = vmatpush3.msra.mxu0 %v55_v3  ;;  %416 = vmatpush3.msra.mxu1 %v176_v15  ;;  %v386_v30 = vld [vmem:[%s608_s4] ss:$0 sm:$0xff] }
  0x16   :  { %411 = vmatmul.mubr.msk.f32.vlgmr.msra.gmra.mxu0 %vm64_vm1, %v54_v4  ;;  %424 = vmatprep.subr.mxu0 %v469_v1  ;;  %v387_v33 = vld [vmem:[%s610_s6] ss:$0 sm:$0xff] }
  0x17   :  { %432 = vmatprep.mubr.msk.f32.mxu0 %vm470_vm0, %v469_v1  ;;  %417 = vmatprep.subr.mxu1 %v469_v1  ;;  %v292_v45 = vld [vmem:[%s613_s9] sm:$0xff] }
  0x18   :  { %418 = vmatpush3.msra.mxu1 %v175_v16  ;;  %425 = vmatpush3.msra.mxu0 %v295_v42  ;;  %v389_v56 = vld [vmem:[%s611_s7] ss:$0 sm:$0xff] }
  0x19   :  { %419 = vmatprep.subr.mxu1 %v469_v1  ;;  %426 = vmatprep.subr.mxu0 %v469_v1  ;;  %v390_v58 = vld [vmem:[%s612_s8] ss:$0 sm:$0xff] }
  0x1a   :  { %420 = vmatpush3.msra.mxu1 %v174_v17  ;;  %427 = vmatpush3.msra.mxu0 %v294_v43  ;;  %v391_v61 = vld [vmem:[#allocation2] ss:$0 sm:$0xff] }
  0x1b   :  { %428 = vmatprep.subr.mxu0 %v469_v1 }
  0x1c   :  { %429 = vmatpush3.msra.mxu0 %v293_v44 }
  0x1d   :  { %430 = vmatprep.subr.mxu0 %v469_v1 }
  0x1e   :  { %431 = vmatpush3.msra.mxu0 %v292_v45 }
  0xd6   :  { %v134_v6 = vpop.f32.mrf.mxu0 }
  0xd7   :  { %v135_v7 = vadd.f32 %v383_v5, %v134_v6 }
  0xd8   :  { %v412_v8 = vpop.f32.mrf.mxu0 }
  0xd9   :  { %v138_v9 = vmul.f32 0.01, %v135_v7 }
  0xdb   :  { %v139_v10 = vmax.f32 %v135_v7, %v138_v9 }
  0xdd   :  { %v143_v11 = vsel %vm142_vm2, %v139_v10, 0.0  ;;  %v148_v12 = vmul.f32 %v139_v10, %v139_v10 }
  0xde   :  { %144 = vadd.xlane.f32.xlu0 %v143_v11 }
  0xdf   :  { %v149_v13 = vsel %vm142_vm2, %v148_v12, 0.0 }
  0xe2   :  { %150 = vadd.xlane.f32.xlu0 %v149_v13 }
 0x167   :  { %v145_v18 = vpop.xlane.xlu0 %144 }
 0x168   :  { %v147_v19 = vmul.f32 0.03125, %v145_v18 }
 0x16a   :  { %v153_v21 = vmul.f32 %v147_v19, %v147_v19  ;;  %v156_v26 = vsub.f32 %v139_v10, %v147_v19 }
 0x16b   :  { %v151_v20 = vpop.xlane.xlu0 %150 }
 0x16c   :  { %v152_v22 = vmul.f32 0.03125, %v151_v20 }
 0x16e   :  { %v154_v23 = vsub.f32 %v152_v22, %v153_v21 }
 0x170   :  { %v155_v24 = vmax.f32 %v154_v23, 0.0 }
 0x172   :  { %v157_v25 = vadd.f32 1e-05, %v155_v24 }
 0x174   :  { %440 = vrsqrt.f32 %v157_v25 }
 0x181   :  { %v441_v27 = vpop.eup %440 }
 0x182   :  { %v159_v29 = vmul.f32 %v441_v27, %v156_v26 }
 0x184   :  { %v166_v31 = vmul.f32 %v385_v28, %v159_v29 }
 0x186   :  { %v173_v32 = vadd.f32 %v386_v30, %v166_v31 }
 0x188   :  { %422 = vmatmul.mubr.msk.f32.vlgmr.msra.gmra.mxu1 %vm142_vm2, %v173_v32 }
 0x248   :  { %v254_v34 = vpop.f32.mrf.mxu1 }
 0x249   :  { %v255_v35 = vadd.f32 %v387_v33, %v254_v34 }
 0x24a   :  { %v423_v36 = vpop.f32.mrf.mxu1 }
 0x24b   :  { %v258_v37 = vmul.f32 0.01, %v255_v35 }
 0x24d   :  { %v259_v38 = vmax.f32 %v255_v35, %v258_v37 }
 0x24f   :  { %v262_v39 = vsel %vm142_vm2, %v259_v38, 0.0  ;;  %v266_v40 = vmul.f32 %v259_v38, %v259_v38 }
 0x250   :  { %263 = vadd.xlane.f32.xlu1 %v262_v39 }
 0x251   :  { %v267_v41 = vsel %vm142_vm2, %v266_v40, 0.0 }
 0x254   :  { %268 = vadd.xlane.f32.xlu1 %v267_v41 }
 0x2d9   :  { %v264_v46 = vpop.xlane.xlu1 %263 }
 0x2da   :  { %v265_v47 = vmul.f32 0.03125, %v264_v46 }
 0x2dc   :  { %v271_v49 = vmul.f32 %v265_v47, %v265_v47  ;;  %v274_v54 = vsub.f32 %v259_v38, %v265_v47 }
 0x2dd   :  { %v269_v48 = vpop.xlane.xlu1 %268 }
 0x2de   :  { %v270_v50 = vmul.f32 0.03125, %v269_v48 }
 0x2e0   :  { %v272_v51 = vsub.f32 %v270_v50, %v271_v49 }
 0x2e2   :  { %v273_v52 = vmax.f32 %v272_v51, 0.0 }
 0x2e4   :  { %v275_v53 = vadd.f32 1e-05, %v273_v52 }
 0x2e6   :  { %442 = vrsqrt.f32 %v275_v53 }
 0x2f3   :  { %v443_v55 = vpop.eup %442 }
 0x2f4   :  { %v277_v57 = vmul.f32 %v443_v55, %v274_v54 }
 0x2f6   :  { %v284_v59 = vmul.f32 %v389_v56, %v277_v57 }
 0x2f8   :  { %v291_v60 = vadd.f32 %v390_v58, %v284_v59 }
 0x2fa   :  { %433 = vmatmul.mubr.msk.f32.vlgmr.msra.gmra.mxu0 %vm142_vm2, %v291_v60 }
 0x3ba   :  { %v372_v62 = vpop.f32.mrf.mxu0 }
 0x3bb   :  { %v373_v63 = vadd.f32 %v391_v61, %v372_v62 }
 0x3bc   :  { %v434_v0 = vpop.f32.mrf.mxu0 }
 0x3bd   :  { %377 = vst.msk [vmem:[%s615_s11] sm:$0xff] %vm376_vm3, %v373_v63 }
 0x3be   :  { %382 = vsyncpa [#allocation4], 1 }

</bundles_post_ra>
